<compile_context>
chip_gen: v7x
topology: tpu7x:2x2x1
jax: 0.10.0
libtpu: 0.0.40
codegen_flags: <defaults>
</compile_context>

<pallas_src>
import functools

import jax
import jax.numpy as jnp
from jax import lax
from jax.experimental import pallas as pl
from jax.experimental.pallas import tpu as pltpu

IN_DIM = 20
HID_DIM = 256
OUT_DIM = 10
LANE = 128  # batch maps to lanes in the transposed layout


def mlp_kernel(x_ref, w1_ref, b1_ref, w2_ref, b2_ref, o_ref):
    # h^T = relu(W1 @ x^T + b1)  -> (HID_DIM, tb); contraction on x's last axis
    # (MXU trans_b), f32 accumulation.
    h_t = lax.dot_general(
        w1_ref[...], x_ref[...],
        dimension_numbers=(((1,), (1,)), ((), ())),
        preferred_element_type=jnp.float32)
    h_t = jnp.maximum(h_t + b1_ref[...], 0.0)
    # o^T = W2 @ h^T + b2  -> (OUT_DIM, tb); only 10 real rows are stored.
    o_t = jnp.dot(w2_ref[...], h_t, preferred_element_type=jnp.float32) + b2_ref[...]
    o_ref[...] = o_t.astype(o_ref.dtype)


def _cdiv(a, b):
    return (a + b - 1) // b


def _round_up(n, m):
    return ((n + m - 1) // m) * m


@functools.partial(jax.jit, static_argnames=("block_b",))
def mlp_forward(x, w1, b1_col, w2, b2_col, *, block_b=1024):
    """x: (B, 20); w1: (256, 20); b1_col: (256, 1); w2: (10, 256); b2_col: (10, 1).

    Returns (B, 10). Batch streams over the grid (mapped to lanes); weights stay
    resident in VMEM (constant index_map -> DMA'd once).
    """
    B = x.shape[0]
    n_steps = _cdiv(B, block_b)
    if B >= 1024:
        # Keep both v7x TensorCores busy once the batch is large enough to split.
        n_steps = max(n_steps, 2)
    tb = _round_up(_cdiv(B, n_steps), LANE)  # lane dim -> multiple of 128
    b_pad = n_steps * tb
    if b_pad != B:
        x = jnp.pad(x, ((0, b_pad - B), (0, 0)))

    flops = 2 * b_pad * (IN_DIM * HID_DIM + HID_DIM * OUT_DIM)
    bytes_accessed = 4 * (
        b_pad * IN_DIM                       # x in
        + HID_DIM * IN_DIM + HID_DIM         # W1, b1 (once)
        + OUT_DIM * HID_DIM + OUT_DIM        # W2, b2 (once)
        + OUT_DIM * b_pad                    # out (narrow, no padded lanes)
    )

    out_t = pl.pallas_call(
        mlp_kernel,
        out_shape=jax.ShapeDtypeStruct((OUT_DIM, b_pad), x.dtype),
        grid=(n_steps,),
        in_specs=[
            pl.BlockSpec((tb, IN_DIM), lambda i: (i, 0)),        # x: streams per step
            pl.BlockSpec((HID_DIM, IN_DIM), lambda i: (0, 0)),   # W1: resident
            pl.BlockSpec((HID_DIM, 1), lambda i: (0, 0)),        # b1 column: resident
            pl.BlockSpec((OUT_DIM, HID_DIM), lambda i: (0, 0)),  # W2: resident
            pl.BlockSpec((OUT_DIM, 1), lambda i: (0, 0)),        # b2 column: resident
        ],
        out_specs=pl.BlockSpec((OUT_DIM, tb), lambda i: (0, i)),
        compiler_params=pltpu.CompilerParams(
            dimension_semantics=("parallel",),
        ),
        cost_estimate=pl.CostEstimate(
            flops=flops, transcendentals=0, bytes_accessed=bytes_accessed),
    )(x, w1, b1_col, w2, b2_col)

    # (OUT_DIM, b_pad) -> (B, OUT_DIM); cheap transpose over 40 B/row of real data.
    return out_t[:, :B].T


def init_params(key):
    """Deterministic init matching nn.Linear layouts:
       hidden.weight (256, 20), hidden.bias (256,), output.weight (10, 256),
       output.bias (10,). Biases are reshaped once (here, not per call) to column
       vectors for the kernel's features-major layout."""
    k1, k2, k3, k4 = jax.random.split(key, 4)
    lim1 = 1.0 / jnp.sqrt(jnp.float32(IN_DIM))
    lim2 = 1.0 / jnp.sqrt(jnp.float32(HID_DIM))
    w1 = jax.random.uniform(k1, (HID_DIM, IN_DIM), jnp.float32, -lim1, lim1)
    b1 = jax.random.uniform(k2, (HID_DIM,), jnp.float32, -lim1, lim1)
    w2 = jax.random.uniform(k3, (OUT_DIM, HID_DIM), jnp.float32, -lim2, lim2)
    b2 = jax.random.uniform(k4, (OUT_DIM,), jnp.float32, -lim2, lim2)
    return w1, b1.reshape(HID_DIM, 1), w2, b2.reshape(OUT_DIM, 1)


def _ref(x, w1, b1_col, w2, b2_col):
    h = jnp.maximum(x @ w1.T + b1_col[:, 0], 0.0)
    return h @ w2.T + b2_col[:, 0]


if __name__ == "__main__":
    key = jax.random.PRNGKey(0)
    kx, kp, kb, kc = jax.random.split(key, 4)
    w1, b1, w2, b2 = init_params(kp)

    # 1) Spec-sized input: batch=2 (matches torch.randn(size=(2, 20))).
    x = jax.random.normal(kx, (2, IN_DIM), jnp.float32)
    out = jax.block_until_ready(mlp_forward(x, w1, b1, w2, b2))
    ref = _ref(x, w1, b1, w2, b2)
    assert out.shape == (2, OUT_DIM)
    assert jnp.allclose(out, ref, atol=1e-5, rtol=1e-5)

    # 2) Large batch: exercises the multi-step grid (2 steps of 512) with resident weights.
    xb = jax.random.normal(kb, (1024, IN_DIM), jnp.float32)
    outb = jax.block_until_ready(mlp_forward(xb, w1, b1, w2, b2))
    refb = _ref(xb, w1, b1, w2, b2)
    assert outb.shape == (1024, OUT_DIM)
    assert jnp.allclose(outb, refb, atol=1e-4, rtol=1e-5)

    # 3) Ragged batch (not a multiple of the tile): exercises adaptive tb / padding.
    xc = jax.random.normal(kc, (300, IN_DIM), jnp.float32)
    outc = jax.block_until_ready(mlp_forward(xc, w1, b1, w2, b2))
    refc = _ref(xc, w1, b1, w2, b2)
    assert outc.shape == (300, OUT_DIM)
    assert jnp.allclose(outc, refc, atol=1e-4, rtol=1e-5)

    print("KERNEL_OK")
</pallas_src>

<mosaic_0001>
module attributes {stable_mosaic.version = 11 : i64} {
  func.func @mlp_kernel(%arg0: i32, %arg1: memref<128x20xf32, #tpu.memory_space<vmem>>, %arg2: memref<256x20xf32, #tpu.memory_space<vmem>>, %arg3: memref<256x1xf32, #tpu.memory_space<vmem>>, %arg4: memref<10x256xf32, #tpu.memory_space<vmem>>, %arg5: memref<10x1xf32, #tpu.memory_space<vmem>>, %arg6: memref<10x128xf32, #tpu.memory_space<vmem>>) attributes {dimension_semantics = [#tpu.dimension_semantics<parallel>], iteration_bounds = array<i64: 1>, scalar_prefetch = 0 : i64, scratch_operands = 0 : i64, tpu.core_type = #tpu.core_type<tc>, window_params = [{transform_indices = @transform_0, window_bounds = array<i64: 128, 20>}, {pipeline_mode = #tpu.pipeline_mode<synchronous>, transform_indices = @transform_1, window_bounds = array<i64: 256, 20>}, {pipeline_mode = #tpu.pipeline_mode<synchronous>, transform_indices = @transform_2, window_bounds = array<i64: 256, 1>}, {pipeline_mode = #tpu.pipeline_mode<synchronous>, transform_indices = @transform_3, window_bounds = array<i64: 10, 256>}, {pipeline_mode = #tpu.pipeline_mode<synchronous>, transform_indices = @transform_4, window_bounds = array<i64: 10, 1>}, {transform_indices = @transform_5, window_bounds = array<i64: 10, 128>}]} {
    %c0 = arith.constant 0 : index
    %c0_0 = arith.constant 0 : index
    %0 = vector.load %arg2[%c0, %c0_0] : memref<256x20xf32, #tpu.memory_space<vmem>>, vector<256x20xf32>
    %c0_1 = arith.constant 0 : index
    %c0_2 = arith.constant 0 : index
    %1 = vector.load %arg1[%c0_1, %c0_2] : memref<128x20xf32, #tpu.memory_space<vmem>>, vector<128x20xf32>
    %cst = arith.constant dense<0.000000e+00> : vector<256x128xf32>
    %2 = tpu.matmul %0, %1, %cst {dimension_numbers = #tpu.dot_dimension_numbers<[1], [1], [0], [0], [0, 0, 1, 0], [], []>} : vector<256x20xf32>, vector<128x20xf32>, vector<256x128xf32> -> vector<256x128xf32>
    %c0_3 = arith.constant 0 : index
    %c0_4 = arith.constant 0 : index
    %3 = vector.load %arg3[%c0_3, %c0_4] : memref<256x1xf32, #tpu.memory_space<vmem>>, vector<256x1xf32>
    %4 = vector.broadcast %3 : vector<256x1xf32> to vector<256x128xf32>
    %5 = arith.addf %2, %4 : vector<256x128xf32>
    %cst_5 = arith.constant 0.000000e+00 : f32
    %6 = vector.broadcast %cst_5 : f32 to vector<256x128xf32>
    %7 = arith.maximumf %5, %6 : vector<256x128xf32>
    %c0_6 = arith.constant 0 : index
    %c0_7 = arith.constant 0 : index
    %8 = vector.load %arg4[%c0_6, %c0_7] : memref<10x256xf32, #tpu.memory_space<vmem>>, vector<10x256xf32>
    %cst_8 = arith.constant dense<0.000000e+00> : vector<10x128xf32>
    %9 = tpu.matmul %8, %7, %cst_8 {dimension_numbers = #tpu.dot_dimension_numbers<[1], [0], [0], [1], [0, 0, 1, 1], [], []>} : vector<10x256xf32>, vector<256x128xf32>, vector<10x128xf32> -> vector<10x128xf32>
    %c0_9 = arith.constant 0 : index
    %c0_10 = arith.constant 0 : index
    %10 = vector.load %arg5[%c0_9, %c0_10] : memref<10x1xf32, #tpu.memory_space<vmem>>, vector<10x1xf32>
    %11 = vector.broadcast %10 : vector<10x1xf32> to vector<10x128xf32>
    %12 = arith.addf %9, %11 : vector<10x128xf32>
    %c0_11 = arith.constant 0 : index
    %c0_12 = arith.constant 0 : index
    %13 = vector.load %arg6[%c0_11, %c0_12] : memref<10x128xf32, #tpu.memory_space<vmem>>, vector<10x128xf32>
    tpu.vector_store %arg6[%c0_11, %c0_12], %12 {strides = array<i32>} : memref<10x128xf32, #tpu.memory_space<vmem>>, vector<10x128xf32>,
    return
  }
  func.func @transform_0(%arg0: i32) -> (i32, i32) {
    %c0_i32 = arith.constant 0 : i32
    %c0_i32_0 = arith.constant 0 : i32
    return %arg0, %c0_i32 : i32, i32
  }
  func.func @transform_1(%arg0: i32) -> (i32, i32) {
    %c0_i32 = arith.constant 0 : i32
    %c0_i32_0 = arith.constant 0 : i32
    %c0_i32_1 = arith.constant 0 : i32
    return %c0_i32, %c0_i32_0 : i32, i32
  }
  func.func @transform_2(%arg0: i32) -> (i32, i32) {
    %c0_i32 = arith.constant 0 : i32
    %c0_i32_0 = arith.constant 0 : i32
    %c0_i32_1 = arith.constant 0 : i32
    return %c0_i32, %c0_i32_0 : i32, i32
  }
  func.func @transform_3(%arg0: i32) -> (i32, i32) {
    %c0_i32 = arith.constant 0 : i32
    %c0_i32_0 = arith.constant 0 : i32
    %c0_i32_1 = arith.constant 0 : i32
    return %c0_i32, %c0_i32_0 : i32, i32
  }
  func.func @transform_4(%arg0: i32) -> (i32, i32) {
    %c0_i32 = arith.constant 0 : i32
    %c0_i32_0 = arith.constant 0 : i32
    %c0_i32_1 = arith.constant 0 : i32
    return %c0_i32, %c0_i32_0 : i32, i32
  }
  func.func @transform_5(%arg0: i32) -> (i32, i32) {
    %c0_i32 = arith.constant 0 : i32
    %c0_i32_0 = arith.constant 0 : i32
    return %c0_i32, %arg0 : i32, i32
  }
}

</mosaic_0001>

<bundles_post_ra>
// kernel: mlp_forward.1
= control target key start
LH: loop header
LB: loop body
LE: loop exit
PB: predicated region body
PF: predicated region fallthrough
CT: control target
= control target key end

     0   :  { %vm260_vm0 = vcmask 162816   ;;  %v1056_v3 = vmov 0   ;;  %s1493_s0 = inlined_call_operand.vmem [shape: f32[128,20], index: 0, kind: input, shape index: {}]   ;;  %s1494_s1 = inlined_call_operand.vmem [shape: f32[256,20], index: 1, kind: input, shape index: {}]   ;;  %s1495_s2 = inlined_call_operand.vmem [shape: f32[256,1], index: 2, kind: input, shape index: {}]   ;;  %s1496_s4 = inlined_call_operand.vmem [shape: f32[10,1], index: 4, kind: input, shape index: {}]   ;;  %s1497_s3 = inlined_call_operand.vmem [shape: f32[10,256], index: 3, kind: input, shape index: {}]   ;;  %s1498_s5 = inlined_call_operand.vmem [shape: f32[10,128], index: 5, kind: output, shape index: {}]  }
   0x1   :  { %v52_v0 = vld [vmem:[%s1493_s0] sm:$0xff]  ;;  %v53_v1 = vld [vmem:[%s1493_s0 + $0x8] sm:$0xff]  ;;  %vm1095_vm1 = vmpackc.low %vm260_vm0, %vm260_vm0  ;;  %1055 = vset.pattern.permute.xlu1 %v1056_v3  ;;  %1054 = vset.pattern.permute.xlu0 %v1056_v3 }
   0x2   :  { %v973_v4 = vpack.c.bf16 %v53_v1, %v52_v0  ;;  %v54_v5 = vld [vmem:[%s1493_s0 + $0x10] sm:$0xff]  ;;  %v55_v6 = vld [vmem:[%s1493_s0 + $0x18] sm:$0xff]  ;;  %v20_v8 = vld [vmem:[%s1494_s1] sm:$0xff] }
   0x3   :  { %v979_v7 = vpack.c.bf16 %v55_v6, %v54_v5  ;;  %v56_v9 = vld [vmem:[%s1493_s0 + $0x20] sm:$0xff]  ;;  %v57_v10 = vld [vmem:[%s1493_s0 + $0x28] sm:$0xff]  ;;  %925 = vmatprep.mubr.msk.f32.mxu0 %vm260_vm0, %v20_v8  ;;  %v58_v16 = vld [vmem:[%s1493_s0 + $0x30] sm:$0xff] }
   0x4   :  { %975 = vmatprep.subr.msk.bf16.mxu0 %vm1095_vm1, %v973_v4  ;;  %v985_v11 = vpack.c.bf16 %v57_v10, %v56_v9  ;;  %v84_v12 = vld [vmem:[%s1495_s2 + $0x80] sm:$0xff]  ;;  %v85_v14 = vld [vmem:[%s1495_s2 + $0x88] sm:$0xff]  ;;  %v59_v17 = vld [vmem:[%s1493_s0 + $0x38] sm:$0xff] }
   0x5   :  { %978 = vmatpush3.bf16.xpose.msk.msra.mxu0 %vm1095_vm1, %v973_v4  ;;  %182 = vperm.xlu0 %1054, %v84_v12   ;;  %v68_v13 = vld [vmem:[%s1495_s2] sm:$0xff]  ;;  %v69_v15 = vld [vmem:[%s1495_s2 + $0x8] sm:$0xff]  ;;  %v86_v18 = vld [vmem:[%s1495_s2 + $0x90] sm:$0xff]  ;;  %v991_v20 = vpack.c.bf16 %v59_v17, %v58_v16 }
   0x6   :  { %981 = vmatprep.subr.msk.bf16.mxu0 %vm1095_vm1, %v979_v7  ;;  %102 = vperm.xlu1 %1055, %v68_v13   ;;  %v87_v19 = vld [vmem:[%s1495_s2 + $0x98] sm:$0xff]  ;;  %v70_v21 = vld [vmem:[%s1495_s2 + $0x10] sm:$0xff]  ;;  %v60_v23 = vld [vmem:[%s1493_s0 + $0x40] sm:$0xff] }
   0x7   :  { %v71_v22 = vld [vmem:[%s1495_s2 + $0x18] sm:$0xff]  ;;  %v61_v24 = vld [vmem:[%s1493_s0 + $0x48] sm:$0xff]  ;;  %v88_v25 = vld [vmem:[%s1495_s2 + $0xa0] sm:$0xff] }
   0x8   :  { %v89_v26 = vld [vmem:[%s1495_s2 + $0xa8] sm:$0xff]  ;;  %v997_v27 = vpack.c.bf16 %v61_v24, %v60_v23  ;;  %v72_v28 = vld [vmem:[%s1495_s2 + $0x20] sm:$0xff]  ;;  %v62_v30 = vld [vmem:[%s1493_s0 + $0x50] sm:$0xff] }
   0x9   :  { %187 = vperm.xlu0 %1054, %v85_v14   ;;  %v73_v29 = vld [vmem:[%s1495_s2 + $0x28] sm:$0xff]  ;;  %v63_v31 = vld [vmem:[%s1493_s0 + $0x58] sm:$0xff]  ;;  %v90_v32 = vld [vmem:[%s1495_s2 + $0xb0] sm:$0xff] }
   0xa   :  { %107 = vperm.xlu1 %1055, %v69_v15   ;;  %v91_v33 = vld [vmem:[%s1495_s2 + $0xb8] sm:$0xff]  ;;  %v1003_v34 = vpack.c.bf16 %v63_v31, %v62_v30  ;;  %v74_v35 = vld [vmem:[%s1495_s2 + $0x30] sm:$0xff]  ;;  %v64_v37 = vld [vmem:[%s1493_s0 + $0x60] sm:$0xff] }
   0xb   :  { %v75_v36 = vld [vmem:[%s1495_s2 + $0x38] sm:$0xff]  ;;  %v65_v38 = vld [vmem:[%s1493_s0 + $0x68] sm:$0xff]  ;;  %v92_v39 = vld [vmem:[%s1495_s2 + $0xc0] sm:$0xff] }
   0xc   :  { %v93_v40 = vld [vmem:[%s1495_s2 + $0xc8] sm:$0xff]  ;;  %v1009_v41 = vpack.c.bf16 %v65_v38, %v64_v37  ;;  %v76_v42 = vld [vmem:[%s1495_s2 + $0x40] sm:$0xff]  ;;  %v66_v44 = vld [vmem:[%s1493_s0 + $0x70] sm:$0xff] }
   0xd   :  { %984 = vmatpush3.bf16.xpose.msk.msra.mxu0 %vm1095_vm1, %v979_v7  ;;  %192 = vperm.xlu0 %1054, %v86_v18   ;;  %v77_v43 = vld [vmem:[%s1495_s2 + $0x48] sm:$0xff]  ;;  %v67_v45 = vld [vmem:[%s1493_s0 + $0x78] sm:$0xff]  ;;  %v94_v46 = vld [vmem:[%s1495_s2 + $0xd0] sm:$0xff] }
   0xe   :  { %987 = vmatprep.subr.msk.bf16.mxu0 %vm1095_vm1, %v985_v11  ;;  %197 = vperm.xlu1 %1055, %v87_v19   ;;  %v95_v47 = vld [vmem:[%s1495_s2 + $0xd8] sm:$0xff]  ;;  %v1015_v48 = vpack.c.bf16 %v67_v45, %v66_v44  ;;  %v78_v49 = vld [vmem:[%s1495_s2 + $0x50] sm:$0xff]  ;;  %v96_v51 = vld [vmem:[%s1495_s2 + $0xe0] sm:$0xff] }
   0xf   :  { %v79_v50 = vld [vmem:[%s1495_s2 + $0x58] sm:$0xff]  ;;  %v97_v52 = vld [vmem:[%s1495_s2 + $0xe8] sm:$0xff]  ;;  %v80_v53 = vld [vmem:[%s1495_s2 + $0x60] sm:$0xff] }
  0x10   :  { %v81_v54 = vld [vmem:[%s1495_s2 + $0x68] sm:$0xff]  ;;  %v98_v55 = vld [vmem:[%s1495_s2 + $0xf0] sm:$0xff]  ;;  %v99_v57 = vld [vmem:[%s1495_s2 + $0xf8] sm:$0xff] }
  0x11   :  { %112 = vperm.xlu0 %1054, %v70_v21   ;;  %v21_v56 = vld [vmem:[%s1494_s1 + $0x8] sm:$0xff]  ;;  %v22_v58 = vld [vmem:[%s1494_s1 + $0x10] sm:$0xff]  ;;  %v23_v60 = vld [vmem:[%s1494_s1 + $0x18] sm:$0xff] }
  0x12   :  { %117 = vperm.xlu1 %1055, %v71_v22   ;;  %v82_v59 = vld [vmem:[%s1495_s2 + $0x70] sm:$0xff]  ;;  %v83_v61 = vld [vmem:[%s1495_s2 + $0x78] sm:$0xff]  ;;  %v24_v62 = vld [vmem:[%s1494_s1 + $0x20] sm:$0xff] }
  0x13   :  { %v666_v63 = vld [vmem:[%s1496_s4] sm:$0xff]  ;;  %v25_v0 = vld [vmem:[%s1494_s1 + $0x28] sm:$0xff]  ;;  %v26_v2 = vld [vmem:[%s1494_s1 + $0x30] sm:$0xff] }
  0x14   :  { %v667_v1 = vld [vmem:[%s1496_s4 + $0x8] sm:$0x3]  ;;  %v27_v3 = vld [vmem:[%s1494_s1 + $0x38] sm:$0xff]  ;;  %v28_v4 = vld [vmem:[%s1494_s1 + $0x40] sm:$0xff] }
  0x15   :  { %990 = vmatpush3.bf16.xpose.msk.msra.mxu0 %vm1095_vm1, %v985_v11  ;;  %202 = vperm.xlu0 %1054, %v88_v25   ;;  %v29_v5 = vld [vmem:[%s1494_s1 + $0x48] sm:$0xff]  ;;  %v30_v6 = vld [vmem:[%s1494_s1 + $0x50] sm:$0xff]  ;;  %v31_v7 = vld [vmem:[%s1494_s1 + $0x58] sm:$0xff] }
  0x16   :  { %993 = vmatprep.subr.msk.bf16.mxu0 %vm1095_vm1, %v991_v20  ;;  %207 = vperm.xlu1 %1055, %v89_v26   ;;  %v32_v8 = vld [vmem:[%s1494_s1 + $0x60] sm:$0xff]  ;;  %v33_v9 = vld [vmem:[%s1494_s1 + $0x68] sm:$0xff]  ;;  %v34_v10 = vld [vmem:[%s1494_s1 + $0x70] sm:$0xff] }
  0x17   :  { %v35_v11 = vld [vmem:[%s1494_s1 + $0x78] sm:$0xff]  ;;  %v36_v12 = vld [vmem:[%s1494_s1 + $0x80] sm:$0xff]  ;;  %v37_v13 = vld [vmem:[%s1494_s1 + $0x88] sm:$0xff] }
  0x18   :  { %v38_v14 = vld [vmem:[%s1494_s1 + $0x90] sm:$0xff]  ;;  %v39_v15 = vld [vmem:[%s1494_s1 + $0x98] sm:$0xff]  ;;  %v40_v16 = vld [vmem:[%s1494_s1 + $0xa0] sm:$0xff] }
  0x19   :  { %122 = vperm.xlu0 %1054, %v72_v28   ;;  %v41_v17 = vld [vmem:[%s1494_s1 + $0xa8] sm:$0xff]  ;;  %v42_v18 = vld [vmem:[%s1494_s1 + $0xb0] sm:$0xff]  ;;  %v43_v19 = vld [vmem:[%s1494_s1 + $0xb8] sm:$0xff] }
  0x1a   :  { %127 = vperm.xlu1 %1055, %v73_v29   ;;  %v45_v21 = vld [vmem:[%s1494_s1 + $0xc8] sm:$0xff]  ;;  %v46_v22 = vld [vmem:[%s1494_s1 + $0xd0] sm:$0xff]  ;;  %v47_v23 = vld [vmem:[%s1494_s1 + $0xd8] sm:$0xff] }
  0x1b   :  { %v48_v24 = vld [vmem:[%s1494_s1 + $0xe0] sm:$0xff]  ;;  %v49_v25 = vld [vmem:[%s1494_s1 + $0xe8] sm:$0xff]  ;;  %v50_v26 = vld [vmem:[%s1494_s1 + $0xf0] sm:$0xff] }
  0x1c   :  { %v663_v30 = vld [vmem:[%s1497_s3 + $0x8] sm:$0xff] }
  0x1d   :  { %996 = vmatpush3.bf16.xpose.msk.msra.mxu0 %vm1095_vm1, %v991_v20  ;;  %212 = vperm.xlu0 %1054, %v90_v32   ;;  %v44_v20 = vld [vmem:[%s1494_s1 + $0xc0] sm:$0xff] }
  0x1e   :  { %999 = vmatprep.subr.msk.bf16.mxu0 %vm1095_vm1, %v997_v27  ;;  %217 = vperm.xlu1 %1055, %v91_v33  }
  0x1f   :  { %742 = vmatprep.mubr.f32.mxu1 %v663_v30 }
  0x21   :  { %132 = vperm.xlu0 %1054, %v74_v35  }
  0x22   :  { %137 = vperm.xlu1 %1055, %v75_v36  }
  0x25   :  { %1002 = vmatpush3.bf16.xpose.msk.msra.mxu0 %vm1095_vm1, %v997_v27  ;;  %222 = vperm.xlu0 %1054, %v92_v39   ;;  %v51_v27 = vld [vmem:[%s1494_s1 + $0xf8] sm:$0xff] }
  0x26   :  { %1005 = vmatprep.subr.msk.bf16.mxu0 %vm1095_vm1, %v1003_v34  ;;  %227 = vperm.xlu1 %1055, %v93_v40  }
  0x29   :  { %142 = vperm.xlu0 %1054, %v76_v42  }
  0x2a   :  { %147 = vperm.xlu1 %1055, %v77_v43  }
  0x2d   :  { %1008 = vmatpush3.bf16.xpose.msk.msra.mxu0 %vm1095_vm1, %v1003_v34  ;;  %232 = vperm.xlu0 %1054, %v94_v46  }
  0x2e   :  { %1011 = vmatprep.subr.msk.bf16.mxu0 %vm1095_vm1, %v1009_v41  ;;  %237 = vperm.xlu1 %1055, %v95_v47  }
  0x31   :  { %152 = vperm.xlu0 %1054, %v78_v49  }
  0x32   :  { %157 = vperm.xlu1 %1055, %v79_v50  }
  0x35   :  { %1014 = vmatpush3.bf16.xpose.msk.msra.mxu0 %vm1095_vm1, %v1009_v41  ;;  %242 = vperm.xlu0 %1054, %v96_v51  }
  0x36   :  { %1017 = vmatprep.subr.msk.bf16.mxu0 %vm1095_vm1, %v1015_v48  ;;  %247 = vperm.xlu1 %1055, %v97_v52  }
  0x39   :  { %162 = vperm.xlu0 %1054, %v80_v53  }
  0x3a   :  { %167 = vperm.xlu1 %1055, %v81_v54  }
  0x3d   :  { %1020 = vmatpush3.bf16.xpose.msk.msra.mxu0 %vm1095_vm1, %v1015_v48  ;;  %252 = vperm.xlu0 %1054, %v98_v55  }
  0x3e   :  { %257 = vperm.xlu1 %1055, %v99_v57  }
  0x41   :  { %172 = vperm.xlu0 %1054, %v82_v59  }
  0x42   :  { %177 = vperm.xlu1 %1055, %v83_v61  }
  0x44   :  { %926 = vmatmul.mubr.msk.f32.vlgmr.msra.gmra.mrb[0].mxu0 %vm260_vm0, %v21_v56 }
  0x45   :  { %928 = vmatprep.mubr.msk.f32.mxu0 %vm260_vm0, %v22_v58  ;;  %670 = vperm.xlu0 %1054, %v666_v63  }
  0x46   :  { %675 = vperm.xlu1 %1055, %v667_v1  }
  0x48   :  { %929 = vmatmul.mubr.msk.f32.gmra.mrb[2].mxu0 %vm260_vm0, %v23_v60 }
  0x49   :  { %931 = vmatprep.mubr.msk.f32.mxu0 %vm260_vm0, %v24_v62 }
  0x4c   :  { %932 = vmatmul.mubr.msk.f32.gmra.mrb[4].mxu0 %vm260_vm0, %v25_v0 }
  0x4d   :  { %934 = vmatprep.mubr.msk.f32.mxu0 %vm260_vm0, %v26_v2 }
  0x50   :  { %935 = vmatmul.mubr.msk.f32.gmra.mrb[6].mxu0 %vm260_vm0, %v27_v3 }
  0x51   :  { %937 = vmatprep.mubr.msk.f32.mxu0 %vm260_vm0, %v28_v4 }
  0x54   :  { %938 = vmatmul.mubr.msk.f32.gmra.mrb[8].mxu0 %vm260_vm0, %v29_v5 }
  0x55   :  { %940 = vmatprep.mubr.msk.f32.mxu0 %vm260_vm0, %v30_v6 }
  0x58   :  { %941 = vmatmul.mubr.msk.f32.gmra.mrb[10].mxu0 %vm260_vm0, %v31_v7 }
  0x59   :  { %943 = vmatprep.mubr.msk.f32.mxu0 %vm260_vm0, %v32_v8 }
  0x5c   :  { %944 = vmatmul.mubr.msk.f32.gmra.mrb[12].mxu0 %vm260_vm0, %v33_v9 }
  0x5d   :  { %946 = vmatprep.mubr.msk.f32.mxu0 %vm260_vm0, %v34_v10 }
  0x60   :  { %947 = vmatmul.mubr.msk.f32.gmra.mrb[14].mxu0 %vm260_vm0, %v35_v11 }
  0x61   :  { %949 = vmatprep.mubr.msk.f32.mxu0 %vm260_vm0, %v36_v12 }
  0x64   :  { %950 = vmatmul.mubr.msk.f32.gmra.mrb[16].mxu0 %vm260_vm0, %v37_v13 }
  0x65   :  { %952 = vmatprep.mubr.msk.f32.mxu0 %vm260_vm0, %v38_v14 }
  0x68   :  { %953 = vmatmul.mubr.msk.f32.gmra.mrb[18].mxu0 %vm260_vm0, %v39_v15 }
  0x69   :  { %955 = vmatprep.mubr.msk.f32.mxu0 %vm260_vm0, %v40_v16 }
  0x6c   :  { %956 = vmatmul.mubr.msk.f32.gmra.mrb[20].mxu0 %vm260_vm0, %v41_v17 }
  0x6d   :  { %958 = vmatprep.mubr.msk.f32.mxu0 %vm260_vm0, %v42_v18 }
  0x70   :  { %959 = vmatmul.mubr.msk.f32.gmra.mrb[22].mxu0 %vm260_vm0, %v43_v19 }
  0x71   :  { %961 = vmatprep.mubr.msk.f32.mxu0 %vm260_vm0, %v44_v20 }
  0x74   :  { %962 = vmatmul.mubr.msk.f32.gmra.mrb[24].mxu0 %vm260_vm0, %v45_v21 }
  0x75   :  { %964 = vmatprep.mubr.msk.f32.mxu0 %vm260_vm0, %v46_v22 }
  0x78   :  { %965 = vmatmul.mubr.msk.f32.gmra.mrb[26].mxu0 %vm260_vm0, %v47_v23 }
  0x79   :  { %967 = vmatprep.mubr.msk.f32.mxu0 %vm260_vm0, %v48_v24 }
  0x7c   :  { %968 = vmatmul.mubr.msk.f32.gmra.mrb[28].mxu0 %vm260_vm0, %v49_v25 }
  0x7d   :  { %970 = vmatprep.mubr.msk.f32.mxu0 %vm260_vm0, %v50_v26 }
  0x80   :  { %971 = vmatmul.mubr.msk.f32.gmra.mrb[30].mxu0 %vm260_vm0, %v51_v27 }
  0x84   :  { %v1403_v29 = vpop.permute.xlu0 %182 }
  0x85   :  { %v103_v28 = vpop.permute.xlu1 %102 }
  0x88   :  { %v1408_v32 = vpop.permute.xlu0 %187 }
  0x89   :  { %v108_v31 = vpop.permute.xlu1 %107 }
  0x8c   :  { %v1412_v34 = vpop.permute.xlu0 %192 }
  0x8d   :  { %v1410_v33 = vpop.permute.xlu1 %197 }
  0x90   :  { %v113_v36 = vpop.permute.xlu0 %112 }
  0x91   :  { %v118_v35 = vpop.permute.xlu1 %117 }
  0x94   :  { %v1416_v38 = vpop.permute.xlu0 %202 }
  0x95   :  { %v1414_v37 = vpop.permute.xlu1 %207 }
  0x98   :  { %v123_v40 = vpop.permute.xlu0 %122 }
  0x99   :  { %v128_v39 = vpop.permute.xlu1 %127 }
  0x9c   :  { %v1420_v42 = vpop.permute.xlu0 %212 }
  0x9d   :  { %v1418_v41 = vpop.permute.xlu1 %217 }
  0xa0   :  { %v133_v44 = vpop.permute.xlu0 %132 }
  0xa1   :  { %v138_v43 = vpop.permute.xlu1 %137 }
  0xa4   :  { %v1424_v46 = vpop.permute.xlu0 %222 }
  0xa5   :  { %v1422_v45 = vpop.permute.xlu1 %227 }
  0xa8   :  { %v143_v48 = vpop.permute.xlu0 %142 }
  0xa9   :  { %v148_v47 = vpop.permute.xlu1 %147 }
  0xac   :  { %v1428_v50 = vpop.permute.xlu0 %232 }
  0xad   :  { %v1426_v49 = vpop.permute.xlu1 %237 }
  0xb0   :  { %v153_v59 = vpop.permute.xlu0 %152 }
  0xb1   :  { %v158_v56 = vpop.permute.xlu1 %157 }
  0xb4   :  { %v1436_v8 = vpop.permute.xlu0 %242 }
  0xb5   :  { %v1432_v5 = vpop.permute.xlu1 %247 }
  0xb8   :  { %v163_v20 = vpop.permute.xlu0 %162 }
  0xb9   :  { %v168_v17 = vpop.permute.xlu1 %167 }
 0x117   :  { %v927_v51 = vpop.f32.mrb[0].mxu0 }
 0x118   :  { %v477_v52 = vadd.f32 %v927_v51, %v108_v31  ;;  %v471_v53 = vpop.f32.mrb[1].mxu0  ;;  %v1442_v31 = vpop.permute.xlu1 %257 }
 0x119   :  { %v472_v54 = vadd.f32 %v471_v53, %v103_v28 }
 0x11a   :  { %v631_v55 = vmax.f32 %v477_v52, 0.0 }
 0x11b   :  { %v630_v57 = vmax.f32 %v472_v54, 0.0  ;;  %v930_v58 = vpop.f32.mrb[2].mxu0 }
 0x11c   :  { %v487_v60 = vadd.f32 %v930_v58, %v118_v35  ;;  %v481_v61 = vpop.f32.mrb[3].mxu0  ;;  %v178_v54 = vpop.permute.xlu1 %177 }
 0x11d   :  { %v482_v62 = vadd.f32 %v481_v61, %v113_v36  ;;  %v1430_v63 = vpack.c.bf16 %v631_v55, %v630_v57 }
 0x11e   :  { %v633_v0 = vmax.f32 %v487_v60, 0.0 }
 0x11f   :  { %v632_v1 = vmax.f32 %v482_v62, 0.0  ;;  %v933_v2 = vpop.f32.mrb[4].mxu0 }
 0x120   :  { %v497_v3 = vadd.f32 %v933_v2, %v128_v39  ;;  %v491_v4 = vpop.f32.mrb[5].mxu0  ;;  %v1446_v39 = vpop.permute.xlu0 %252 }
 0x121   :  { %v1434_v6 = vpack.c.bf16 %v633_v0, %v632_v1  ;;  %v492_v7 = vadd.f32 %v491_v4, %v123_v40 }
 0x122   :  { %v635_v9 = vmax.f32 %v497_v3, 0.0 }
 0x123   :  { %v634_v10 = vmax.f32 %v492_v7, 0.0  ;;  %v936_v11 = vpop.f32.mrb[6].mxu0 }
 0x124   :  { %v507_v12 = vadd.f32 %v936_v11, %v138_v43  ;;  %v501_v13 = vpop.f32.mrb[7].mxu0  ;;  %v173_v57 = vpop.permute.xlu0 %172 }
 0x125   :  { %v1438_v14 = vpack.c.bf16 %v635_v9, %v634_v10  ;;  %v502_v15 = vadd.f32 %v501_v13, %v133_v44 }
 0x126   :  { %v637_v16 = vmax.f32 %v507_v12, 0.0 }
 0x127   :  { %v636_v18 = vmax.f32 %v502_v15, 0.0  ;;  %v939_v19 = vpop.f32.mrb[8].mxu0 }
 0x128   :  { %v517_v21 = vadd.f32 %v939_v19, %v148_v47  ;;  %v511_v22 = vpop.f32.mrb[9].mxu0 }
 0x129   :  { %v1440_v23 = vpack.c.bf16 %v637_v16, %v636_v18  ;;  %v512_v24 = vadd.f32 %v511_v22, %v143_v48 }
 0x12a   :  { %v639_v25 = vmax.f32 %v517_v21, 0.0 }
 0x12b   :  { %v638_v26 = vmax.f32 %v512_v24, 0.0  ;;  %v942_v27 = vpop.f32.mrb[10].mxu0 }
 0x12c   :  { %v527_v28 = vadd.f32 %v942_v27, %v158_v56  ;;  %v521_v30 = vpop.f32.mrb[11].mxu0 }
 0x12d   :  { %v1444_v35 = vpack.c.bf16 %v639_v25, %v638_v26  ;;  %v522_v36 = vadd.f32 %v521_v30, %v153_v59 }
 0x12e   :  { %v641_v40 = vmax.f32 %v527_v28, 0.0 }
 0x12f   :  { %v640_v43 = vmax.f32 %v522_v36, 0.0  ;;  %v945_v44 = vpop.f32.mrb[12].mxu0 }
 0x130   :  { %v537_v47 = vadd.f32 %v945_v44, %v168_v17  ;;  %v531_v51 = vpop.f32.mrb[13].mxu0 }
 0x131   :  { %v1448_v52 = vpack.c.bf16 %v641_v40, %v640_v43  ;;  %v532_v48 = vadd.f32 %v531_v51, %v163_v20 }
 0x132   :  { %v643_v53 = vmax.f32 %v537_v47, 0.0 }
 0x133   :  { %v642_v55 = vmax.f32 %v532_v48, 0.0  ;;  %v948_v56 = vpop.f32.mrb[14].mxu0 }
 0x134   :  { %v547_v58 = vadd.f32 %v948_v56, %v178_v54  ;;  %v541_v60 = vpop.f32.mrb[15].mxu0 }
 0x135   :  { %v1450_v61 = vpack.c.bf16 %v643_v53, %v642_v55  ;;  %v542_v59 = vadd.f32 %v541_v60, %v173_v57 }
 0x136   :  { %v645_v62 = vmax.f32 %v547_v58, 0.0 }
 0x137   :  { %v644_v0 = vmax.f32 %v542_v59, 0.0  ;;  %v951_v1 = vpop.f32.mrb[16].mxu0 }
 0x138   :  { %v557_v2 = vadd.f32 %v951_v1, %v1408_v32  ;;  %v551_v3 = vpop.f32.mrb[17].mxu0 }
 0x139   :  { %v1453_v4 = vpack.c.bf16 %v645_v62, %v644_v0  ;;  %v552_v7 = vadd.f32 %v551_v3, %v1403_v29  ;;  %v671_v0 = vpop.permute.xlu0 %670 }
 0x13a   :  { %v647_v9 = vmax.f32 %v557_v2, 0.0 }
 0x13b   :  { %v646_v10 = vmax.f32 %v552_v7, 0.0  ;;  %v954_v11 = vpop.f32.mrb[18].mxu0  ;;  %v676_v7 = vpop.permute.xlu1 %675 }
 0x13c   :  { %v567_v12 = vadd.f32 %v954_v11, %v1410_v33  ;;  %v561_v13 = vpop.f32.mrb[19].mxu0 }
 0x13d   :  { %v562_v15 = vadd.f32 %v561_v13, %v1412_v34  ;;  %v1021_v16 = vpack.c.bf16 %v647_v9, %v646_v10 }
 0x13e   :  { %v649_v17 = vmax.f32 %v567_v12, 0.0 }
 0x13f   :  { %v648_v18 = vmax.f32 %v562_v15, 0.0  ;;  %v957_v19 = vpop.f32.mrb[20].mxu0  ;;  %1022 = vmatprep.subr.bf16.mxu1 %v1021_v16 }
 0x140   :  { %v577_v32 = vadd.f32 %v957_v19, %v1414_v37  ;;  %v571_v20 = vpop.f32.mrb[21].mxu0  ;;  %1024 = vmatpush3.bf16.msra.mxu1 %v1430_v63 }
 0x141   :  { %v1025_v21 = vpack.c.bf16 %v649_v17, %v648_v18  ;;  %v572_v29 = vadd.f32 %v571_v20, %v1416_v38 }
 0x142   :  { %v651_v22 = vmax.f32 %v577_v32, 0.0 }
 0x143   :  { %v650_v24 = vmax.f32 %v572_v29, 0.0  ;;  %v960_v25 = vpop.f32.mrb[22].mxu0  ;;  %1026 = vmatprep.subr.bf16.mxu1 %v1025_v21 }
 0x144   :  { %v587_v33 = vadd.f32 %v960_v25, %v1418_v41  ;;  %v581_v34 = vpop.f32.mrb[23].mxu0  ;;  %1028 = vmatpush3.bf16.msra.mxu1 %v1434_v6 }
 0x145   :  { %v1029_v26 = vpack.c.bf16 %v651_v22, %v650_v24  ;;  %v582_v27 = vadd.f32 %v581_v34, %v1420_v42 }
 0x146   :  { %v653_v28 = vmax.f32 %v587_v33, 0.0 }
 0x147   :  { %v652_v37 = vmax.f32 %v582_v27, 0.0  ;;  %v963_v30 = vpop.f32.mrb[24].mxu0  ;;  %1030 = vmatprep.subr.bf16.mxu1 %v1029_v26 }
 0x148   :  { %v597_v63 = vadd.f32 %v963_v30, %v1422_v45  ;;  %v591_v36 = vpop.f32.mrb[25].mxu0  ;;  %1032 = vmatpush3.bf16.msra.mxu1 %v1438_v14 }
 0x149   :  { %v1033_v38 = vpack.c.bf16 %v653_v28, %v652_v37  ;;  %v592_v40 = vadd.f32 %v591_v36, %v1424_v46 }
 0x14a   :  { %v655_v43 = vmax.f32 %v597_v63, 0.0 }
 0x14b   :  { %v654_v41 = vmax.f32 %v592_v40, 0.0  ;;  %v966_v44 = vpop.f32.mrb[26].mxu0  ;;  %1034 = vmatprep.subr.bf16.mxu1 %v1033_v38 }
 0x14c   :  { %v607_v6 = vadd.f32 %v966_v44, %v1426_v49  ;;  %v601_v47 = vpop.f32.mrb[27].mxu0  ;;  %1036 = vmatpush3.bf16.msra.mxu1 %v1440_v23 }
 0x14d   :  { %v1037_v42 = vpack.c.bf16 %v655_v43, %v654_v41  ;;  %v602_v51 = vadd.f32 %v601_v47, %v1428_v50 }
 0x14e   :  { %v657_v48 = vmax.f32 %v607_v6, 0.0 }
 0x14f   :  { %v656_v45 = vmax.f32 %v602_v51, 0.0  ;;  %v969_v53 = vpop.f32.mrb[28].mxu0  ;;  %1038 = vmatprep.subr.bf16.mxu1 %v1037_v42 }
 0x150   :  { %v617_v14 = vadd.f32 %v969_v53, %v1432_v5  ;;  %v611_v54 = vpop.f32.mrb[29].mxu0  ;;  %1040 = vmatpush3.bf16.msra.mxu1 %v1444_v35 }
 0x151   :  { %v1041_v46 = vpack.c.bf16 %v657_v48, %v656_v45  ;;  %v612_v55 = vadd.f32 %v611_v54, %v1436_v8  ;;  %v662_v8 = vld [vmem:[%s1497_s3] sm:$0xff] }
 0x152   :  { %v659_v56 = vmax.f32 %v617_v14, 0.0 }
 0x153   :  { %v658_v49 = vmax.f32 %v612_v55, 0.0  ;;  %v972_v57 = vpop.f32.mrb[30].mxu0  ;;  %1042 = vmatprep.subr.bf16.mxu1 %v1041_v46 }
 0x154   :  { %v627_v23 = vadd.f32 %v972_v57, %v1442_v31  ;;  %v621_v58 = vpop.f32.mrb[31].mxu0  ;;  %1044 = vmatpush3.bf16.msra.mxu1 %v1448_v52  ;;  %v665_v31 = vld [vmem:[%s1497_s3 + $0x18] sm:$0x3] }
 0x155   :  { %v1045_v50 = vpack.c.bf16 %v659_v56, %v658_v49  ;;  %v622_v60 = vadd.f32 %v621_v58, %v1446_v39  ;;  %v664_v39 = vld [vmem:[%s1497_s3 + $0x10] sm:$0x3] }
 0x156   :  { %v661_v59 = vmax.f32 %v627_v23, 0.0 }
 0x157   :  { %v660_v5 = vmax.f32 %v622_v60, 0.0  ;;  %1046 = vmatprep.subr.bf16.mxu1 %v1045_v50 }
 0x158   :  { %1048 = vmatpush3.bf16.msra.mxu1 %v1450_v61 }
 0x159   :  { %v1049_v35 = vpack.c.bf16 %v661_v59, %v660_v5 }
 0x15b   :  { %1050 = vmatprep.subr.bf16.mxu1 %v1049_v35 }
 0x15c   :  { %1052 = vmatpush3.bf16.msra.mxu1 %v1453_v4 }
 0x15f   :  { %743 = vmatmul.mubr.f32.vlgmr.msra.gmra.mrb[0].mxu1 %v662_v8 }
 0x160   :  { %747 = vmatprep.mubr.f32.mxu1 %v665_v31 }
 0x163   :  { %748 = vmatmul.mubr.f32.gmra.mrb[2].mxu1 %v664_v39 }
 0x232   :  { %v887_v52 = vpop.f32.mrb[0].mxu1 }
 0x233   :  { %v888_v61 = vpop.f32.mrb[1].mxu1 }
 0x234   :  { %v889_v62 = vadd.f32 %v888_v61, %v887_v52 }
 0x236   :  { %v745_v1 = vadd.f32 %v889_v62, %v671_v0  ;;  %v890_v2 = vpop.f32.mrb[2].mxu1 }
 0x237   :  { %v891_v3 = vpop.f32.mrb[3].mxu1 }
 0x238   :  { %753 = vst [vmem:[%s1498_s5] sm:$0xff] %v745_v1  ;;  %v892_v4 = vadd.f32 %v891_v3, %v890_v2 }
 0x23a   :  { %v750_v9 = vadd.f32 %v892_v4, %v676_v7 }
 0x23c   :  { %754 = vst [vmem:[%s1498_s5 + $0x8] sm:$0x3] %v750_v9 }

</bundles_post_ra>
